<compile_context>
chip_gen: v7x
topology: tpu7x:2x2x1
jax: 0.10.0
libtpu: 0.0.40
codegen_flags: <defaults>
</compile_context>

<pallas_src>
import functools

import jax
import jax.numpy as jnp
from jax.experimental import pallas as pl
from jax.experimental.pallas import tpu as pltpu


OUT_PAD = 128   # pad the layer-2 output channels to a full lane width


# ----------------------------- Pallas kernel -------------------------------

def gat2_fused_kernel(x_ref, adj_ref, w1_ref, asrc1_ref, adst1_ref, b1_ref,
                      w2_ref, asrc2_ref, adst2_ref, b2_ref, out_ref,
                      *, heads, c1):
    """Fused 2-layer GAT forward (dense-adjacency formulation, inference).

    x_ref     : [N, F_in]        input node features
    adj_ref   : [N, N] int8      adj[i, j] != 0 iff edge j -> i (self-loops incl.)
    w1_ref    : [F_in, H*C1]     layer-1 linear weight
    asrc1_ref : [1, H*C1]        layer-1 att_src (heads flattened along lanes)
    adst1_ref : [1, H*C1]        layer-1 att_dst
    b1_ref    : [1, H*C1]        layer-1 bias
    w2_ref    : [H*C1, OUT_PAD]  layer-2 linear weight (zero-padded lanes)
    asrc2_ref : [1, OUT_PAD]     layer-2 att_src (zero-padded)
    adst2_ref : [1, OUT_PAD]     layer-2 att_dst (zero-padded)
    b2_ref    : [1, OUT_PAD]     layer-2 bias (zero-padded)
    out_ref   : [N, OUT_PAD]     output (caller slices [:, :out_channels])
    """
    neg = -1e30       # finite mask value: robust even if a row had no edges
    slope = 0.2       # GATConv leaky_relu negative slope

    x = x_ref[...].astype(jnp.float32)
    # Edge mask: decoded once (int8 -> f32 -> bool), reused by BOTH layers.
    mask = adj_ref[...].astype(jnp.float32) > 0.0                      # [N, N]

    # ------------- layer 1: GATConv(F_in -> H*C1, concat=True) -------------
    xw1 = jnp.dot(x, w1_ref[...], preferred_element_type=jnp.float32)  # [N, H*C1]

    # Per-node/per-head attention logits: hoisted VPU multiply, then a cheap
    # per-head lane reduce inside the (tiny, statically unrolled) head loop.
    prod_dst1 = xw1 * adst1_ref[...]                                   # [N, H*C1]
    prod_src1 = xw1 * asrc1_ref[...]
    b1 = b1_ref[...]
    w2 = w2_ref[...]                                                   # [H*C1, OUT_PAD]

    n = x.shape[0]
    xw2 = jnp.zeros((n, w2.shape[1]), jnp.float32)   # accumulated layer-2 lin

    for h in range(heads):                           # heads is tiny & static
        lo, hi = h * c1, (h + 1) * c1
        a_dst = jnp.sum(prod_dst1[:, lo:hi], axis=1, keepdims=True)    # [N, 1]
        a_src = jnp.sum(prod_src1[:, lo:hi], axis=1, keepdims=True)    # [N, 1]

        e = a_dst + a_src.T                                            # [N, N]
        e = jnp.where(e > 0, e, slope * e)                             # leaky_relu
        e = jnp.where(mask, e, neg)                                    # mask non-edges
        m = jnp.max(e, axis=1, keepdims=True)                          # self-loop => finite
        p = jnp.exp(e - m)
        s = jnp.sum(p, axis=1, keepdims=True)
        attn = p * pl.reciprocal(s, approx=True)                       # softmax (EUP rcp)

        out_h = jnp.dot(attn, xw1[:, lo:hi],
                        preferred_element_type=jnp.float32)            # [N, C1]
        h_slab = out_h + b1[:, lo:hi]
        h_slab = jnp.where(h_slab > 0, h_slab, jnp.exp(h_slab) - 1.0)  # F.elu

        # Fold this head's slab straight into the layer-2 linear transform:
        #   xw2 += h[:, lo:hi] @ w2[lo:hi, :]   (no concat, no HBM round-trip)
        xw2 = xw2 + jnp.dot(h_slab, w2[lo:hi, :],
                            preferred_element_type=jnp.float32)

    # --------- layer 2: GATConv(H*C1 -> out, heads=1, concat=False) --------
    a_dst2 = jnp.sum(xw2 * adst2_ref[...], axis=1, keepdims=True)      # [N, 1]
    a_src2 = jnp.sum(xw2 * asrc2_ref[...], axis=1, keepdims=True)
    e2 = a_dst2 + a_src2.T
    e2 = jnp.where(e2 > 0, e2, slope * e2)
    e2 = jnp.where(mask, e2, neg)
    m2 = jnp.max(e2, axis=1, keepdims=True)
    p2 = jnp.exp(e2 - m2)
    s2 = jnp.sum(p2, axis=1, keepdims=True)
    attn2 = p2 * pl.reciprocal(s2, approx=True)

    out = jnp.dot(attn2, xw2, preferred_element_type=jnp.float32) + b2_ref[...]
    out_ref[...] = out.astype(out_ref.dtype)        # single lane-dense store


# ------------------------------ JAX wrapper ----------------------------------

def gat_forward(x, adj_i8, params):
    heads = params["heads"]
    c1 = params["hidden"]
    out_c = params["out"]
    n = x.shape[0]
    out_pad = params["w2p"].shape[1]

    kernel = functools.partial(gat2_fused_kernel, heads=heads, c1=c1)
    vmem = pl.BlockSpec(memory_space=pltpu.MemorySpace.VMEM)
    out_full = pl.pallas_call(
        kernel,
        out_shape=jax.ShapeDtypeStruct((n, out_pad), jnp.float32),
        in_specs=[vmem] * 10,
        out_specs=vmem,
    )(x, adj_i8,
      params["w1"], params["asrc1"], params["adst1"], params["b1"],
      params["w2p"], params["asrc2p"], params["adst2p"], params["b2p"])
    return out_full[:, :out_c]


def glorot(key, shape):
    fan_in, fan_out = shape[0], shape[-1]
    limit = jnp.sqrt(6.0 / (fan_in + fan_out))
    return jax.random.uniform(key, shape, jnp.float32, -limit, limit)


# ------------------------- pure-JAX reference (check) -----------------------

def ref_gat_conv(x, w, att_src, att_dst, adj, bias, apply_elu, concat):
    H, C = att_src.shape
    xw = (x @ w).reshape(x.shape[0], H, C)
    a_s = jnp.einsum("nhc,hc->nh", xw, att_src)
    a_d = jnp.einsum("nhc,hc->nh", xw, att_dst)
    e = a_d[:, None, :] + a_s[None, :, :]                # [Ndst, Nsrc, H]
    e = jnp.where(e > 0, e, 0.2 * e)
    e = jnp.where(adj[:, :, None] > 0, e, -jnp.inf)
    attn = jax.nn.softmax(e, axis=1)
    out = jnp.einsum("ijh,jhc->ihc", attn, xw)           # [N, H, C]
    if concat:
        out = out.reshape(x.shape[0], H * C)
    else:
        out = out.mean(axis=1)
    out = out + bias
    if apply_elu:
        out = jnp.where(out > 0, out, jnp.exp(out) - 1.0)
    return out


# --------------------------------- main --------------------------------------

if __name__ == "__main__":
    key = jax.random.PRNGKey(0)
    k = jax.random.split(key, 10)

    # small shapes consistent with the module
    N, F_IN = 16, 8          # nodes, input features (GATConv(-1, ...) infers F_IN)
    HIDDEN, HEADS, OUT = 8, 2, 4
    E = 40                   # number of directed edges

    # node features and random graph (deterministic)
    x = jax.random.normal(k[0], (N, F_IN), jnp.float32)
    src = jax.random.randint(k[1], (E,), 0, N)
    dst = jax.random.randint(k[2], (E,), 0, N)
    edge_weight = jax.random.uniform(k[3], (E,), jnp.float32)  # unused (edge_dim=None)

    # dense adjacency mask with self loops (GATConv add_self_loops=True),
    # stored as int8 (4x less adjacency DMA than f32 at real graph sizes).
    adj = jnp.zeros((N, N), jnp.int8).at[dst, src].set(1)
    adj = jnp.maximum(adj, jnp.eye(N, dtype=jnp.int8))

    # ---- deterministic parameters (GATConv shapes) ----
    w1 = glorot(k[4], (F_IN, HEADS * HIDDEN))            # lin weight (transposed)
    att_src1 = glorot(k[5], (HEADS, HIDDEN))
    att_dst1 = glorot(k[6], (HEADS, HIDDEN))
    b1 = jnp.zeros((1, HEADS * HIDDEN), jnp.float32)

    w2 = glorot(k[7], (HEADS * HIDDEN, OUT))
    att_src2 = glorot(k[8], (1, OUT))
    att_dst2 = glorot(k[9], (1, OUT))
    b2 = jnp.zeros((1, OUT), jnp.float32)

    # kernel-side layouts: per-head att vectors flattened along lanes; the
    # layer-2 output dim zero-padded to a full 128-lane slab (lane-dense store).
    params = dict(
        heads=HEADS, hidden=HIDDEN, out=OUT,
        w1=w1,
        asrc1=att_src1.reshape(1, HEADS * HIDDEN),
        adst1=att_dst1.reshape(1, HEADS * HIDDEN),
        b1=b1,
        w2p=jnp.zeros((HEADS * HIDDEN, OUT_PAD), jnp.float32).at[:, :OUT].set(w2),
        asrc2p=jnp.zeros((1, OUT_PAD), jnp.float32).at[:, :OUT].set(att_src2),
        adst2p=jnp.zeros((1, OUT_PAD), jnp.float32).at[:, :OUT].set(att_dst2),
        b2p=jnp.zeros((1, OUT_PAD), jnp.float32).at[:, :OUT].set(b2),
    )

    out = gat_forward(x, adj, params)
    out = jax.block_until_ready(out)
    assert out.shape == (N, OUT), out.shape

    # sanity check against pure-JAX reference (exact softmax / exact reciprocal)
    adj_f = adj.astype(jnp.float32)
    h_ref = ref_gat_conv(x, w1, att_src1, att_dst1, adj_f, b1,
                         apply_elu=True, concat=True)
    ref = ref_gat_conv(h_ref, w2, att_src2, att_dst2, adj_f, b2,
                       apply_elu=False, concat=False)
    err = float(jnp.max(jnp.abs(out - ref)))
    assert jnp.allclose(out, ref, atol=2e-3, rtol=2e-3), err

    print("KERNEL_OK")
</pallas_src>

<mosaic_0001>
module attributes {stable_mosaic.version = 11 : i64} {
  func.func @gat2_fused_kernel(%arg0: memref<16x8xf32, #tpu.memory_space<vmem>>, %arg1: memref<16x16xi8, #tpu.memory_space<vmem>>, %arg2: memref<8x16xf32, #tpu.memory_space<vmem>>, %arg3: memref<1x16xf32, #tpu.memory_space<vmem>>, %arg4: memref<1x16xf32, #tpu.memory_space<vmem>>, %arg5: memref<1x16xf32, #tpu.memory_space<vmem>>, %arg6: memref<16x128xf32, #tpu.memory_space<vmem>>, %arg7: memref<1x128xf32, #tpu.memory_space<vmem>>, %arg8: memref<1x128xf32, #tpu.memory_space<vmem>>, %arg9: memref<1x128xf32, #tpu.memory_space<vmem>>, %arg10: memref<16x128xf32, #tpu.memory_space<vmem>>) attributes {dimension_semantics = [], scalar_prefetch = 0 : i64, scratch_operands = 0 : i64, tpu.core_type = #tpu.core_type<tc>} {
    %c0 = arith.constant 0 : index
    %c0_0 = arith.constant 0 : index
    %0 = vector.load %arg0[%c0, %c0_0] : memref<16x8xf32, #tpu.memory_space<vmem>>, vector<16x8xf32>
    %c0_1 = arith.constant 0 : index
    %c0_2 = arith.constant 0 : index
    %1 = vector.load %arg1[%c0_1, %c0_2] : memref<16x16xi8, #tpu.memory_space<vmem>>, vector<16x16xi8>
    %2 = arith.sitofp %1 : vector<16x16xi8> to vector<16x16xf32>
    %cst = arith.constant 0.000000e+00 : f32
    %3 = vector.broadcast %cst : f32 to vector<16x16xf32>
    %4 = arith.cmpf ogt, %2, %3 : vector<16x16xf32>
    %c0_3 = arith.constant 0 : index
    %c0_4 = arith.constant 0 : index
    %5 = vector.load %arg2[%c0_3, %c0_4] : memref<8x16xf32, #tpu.memory_space<vmem>>, vector<8x16xf32>
    %cst_5 = arith.constant dense<0.000000e+00> : vector<16x16xf32>
    %6 = tpu.matmul %0, %5, %cst_5 {dimension_numbers = #tpu.dot_dimension_numbers<[1], [0], [0], [1], [0, 0, 1, 1], [], []>} : vector<16x8xf32>, vector<8x16xf32>, vector<16x16xf32> -> vector<16x16xf32>
    %c0_6 = arith.constant 0 : index
    %c0_7 = arith.constant 0 : index
    %7 = vector.load %arg4[%c0_6, %c0_7] : memref<1x16xf32, #tpu.memory_space<vmem>>, vector<1x16xf32>
    %8 = vector.broadcast %7 : vector<1x16xf32> to vector<16x16xf32>
    %9 = arith.mulf %6, %8 : vector<16x16xf32>
    %c0_8 = arith.constant 0 : index
    %c0_9 = arith.constant 0 : index
    %10 = vector.load %arg3[%c0_8, %c0_9] : memref<1x16xf32, #tpu.memory_space<vmem>>, vector<1x16xf32>
    %11 = vector.broadcast %10 : vector<1x16xf32> to vector<16x16xf32>
    %12 = arith.mulf %6, %11 : vector<16x16xf32>
    %c0_10 = arith.constant 0 : index
    %c0_11 = arith.constant 0 : index
    %13 = vector.load %arg5[%c0_10, %c0_11] : memref<1x16xf32, #tpu.memory_space<vmem>>, vector<1x16xf32>
    %c0_12 = arith.constant 0 : index
    %c0_13 = arith.constant 0 : index
    %14 = vector.load %arg6[%c0_12, %c0_13] : memref<16x128xf32, #tpu.memory_space<vmem>>, vector<16x128xf32>
    %cst_14 = arith.constant 0.000000e+00 : f32
    %15 = vector.broadcast %cst_14 : f32 to vector<16x128xf32>
    %16 = vector.extract_strided_slice %9 {offsets = [0, 0], sizes = [16, 8], strides = [1, 1]} : vector<16x16xf32> to vector<16x8xf32>
    %cst_15 = arith.constant dense<0.000000e+00> : vector<16xf32>
    %17 = vector.multi_reduction <add>, %16, %cst_15 [1] : vector<16x8xf32> to vector<16xf32>
    %18 = vector.shape_cast %17 : vector<16xf32> to vector<16x1xf32>
    %19 = vector.extract_strided_slice %12 {offsets = [0, 0], sizes = [16, 8], strides = [1, 1]} : vector<16x16xf32> to vector<16x8xf32>
    %cst_16 = arith.constant dense<0.000000e+00> : vector<16xf32>
    %20 = vector.multi_reduction <add>, %19, %cst_16 [1] : vector<16x8xf32> to vector<16xf32>
    %21 = vector.shape_cast %20 : vector<16xf32> to vector<16x1xf32>
    %22 = tpu.transpose %21, [1, 0] : vector<16x1xf32> -> vector<1x16xf32>
    %23 = vector.broadcast %18 : vector<16x1xf32> to vector<16x16xf32>
    %24 = vector.broadcast %22 : vector<1x16xf32> to vector<16x16xf32>
    %25 = arith.addf %23, %24 : vector<16x16xf32>
    %cst_17 = arith.constant 0.000000e+00 : f32
    %26 = vector.broadcast %cst_17 : f32 to vector<16x16xf32>
    %27 = arith.cmpf ogt, %25, %26 : vector<16x16xf32>
    %cst_18 = arith.constant 2.000000e-01 : f32
    %28 = vector.broadcast %cst_18 : f32 to vector<16x16xf32>
    %29 = arith.mulf %28, %25 : vector<16x16xf32>
    %30 = arith.select %27, %25, %29 : vector<16x16xi1>, vector<16x16xf32>
    %cst_19 = arith.constant -1.000000e+30 : f32
    %31 = vector.broadcast %cst_19 : f32 to vector<16x16xf32>
    %32 = arith.select %4, %30, %31 : vector<16x16xi1>, vector<16x16xf32>
    %cst_20 = arith.constant dense<0xFF800000> : vector<16xf32>
    %33 = vector.multi_reduction <maximumf>, %32, %cst_20 [1] : vector<16x16xf32> to vector<16xf32>
    %34 = vector.shape_cast %33 : vector<16xf32> to vector<16x1xf32>
    %35 = vector.broadcast %34 : vector<16x1xf32> to vector<16x16xf32>
    %36 = arith.subf %32, %35 : vector<16x16xf32>
    %37 = math.exp %36 : vector<16x16xf32>
    %cst_21 = arith.constant dense<0.000000e+00> : vector<16xf32>
    %38 = vector.multi_reduction <add>, %37, %cst_21 [1] : vector<16x16xf32> to vector<16xf32>
    %39 = vector.shape_cast %38 : vector<16xf32> to vector<16x1xf32>
    %40 = tpu.reciprocal %39 {approx = true} : vector<16x1xf32> -> vector<16x1xf32>
    %41 = vector.broadcast %40 : vector<16x1xf32> to vector<16x16xf32>
    %42 = arith.mulf %37, %41 : vector<16x16xf32>
    %43 = vector.extract_strided_slice %6 {offsets = [0, 0], sizes = [16, 8], strides = [1, 1]} : vector<16x16xf32> to vector<16x8xf32>
    %cst_22 = arith.constant dense<0.000000e+00> : vector<16x8xf32>
    %44 = tpu.matmul %42, %43, %cst_22 {dimension_numbers = #tpu.dot_dimension_numbers<[1], [0], [0], [1], [0, 0, 1, 1], [], []>} : vector<16x16xf32>, vector<16x8xf32>, vector<16x8xf32> -> vector<16x8xf32>
    %45 = vector.extract_strided_slice %13 {offsets = [0, 0], sizes = [1, 8], strides = [1, 1]} : vector<1x16xf32> to vector<1x8xf32>
    %46 = vector.broadcast %45 : vector<1x8xf32> to vector<16x8xf32>
    %47 = arith.addf %44, %46 : vector<16x8xf32>
    %cst_23 = arith.constant 0.000000e+00 : f32
    %48 = vector.broadcast %cst_23 : f32 to vector<16x8xf32>
    %49 = arith.cmpf ogt, %47, %48 : vector<16x8xf32>
    %50 = math.exp %47 : vector<16x8xf32>
    %cst_24 = arith.constant 1.000000e+00 : f32
    %51 = vector.broadcast %cst_24 : f32 to vector<16x8xf32>
    %52 = arith.subf %50, %51 : vector<16x8xf32>
    %53 = arith.select %49, %47, %52 : vector<16x8xi1>, vector<16x8xf32>
    %54 = vector.extract_strided_slice %14 {offsets = [0, 0], sizes = [8, 128], strides = [1, 1]} : vector<16x128xf32> to vector<8x128xf32>
    %cst_25 = arith.constant dense<0.000000e+00> : vector<16x128xf32>
    %55 = tpu.matmul %53, %54, %cst_25 {dimension_numbers = #tpu.dot_dimension_numbers<[1], [0], [0], [1], [0, 0, 1, 1], [], []>} : vector<16x8xf32>, vector<8x128xf32>, vector<16x128xf32> -> vector<16x128xf32>
    %56 = arith.addf %15, %55 : vector<16x128xf32>
    %57 = vector.extract_strided_slice %9 {offsets = [0, 8], sizes = [16, 8], strides = [1, 1]} : vector<16x16xf32> to vector<16x8xf32>
    %cst_26 = arith.constant dense<0.000000e+00> : vector<16xf32>
    %58 = vector.multi_reduction <add>, %57, %cst_26 [1] : vector<16x8xf32> to vector<16xf32>
    %59 = vector.shape_cast %58 : vector<16xf32> to vector<16x1xf32>
    %60 = vector.extract_strided_slice %12 {offsets = [0, 8], sizes = [16, 8], strides = [1, 1]} : vector<16x16xf32> to vector<16x8xf32>
    %cst_27 = arith.constant dense<0.000000e+00> : vector<16xf32>
    %61 = vector.multi_reduction <add>, %60, %cst_27 [1] : vector<16x8xf32> to vector<16xf32>
    %62 = vector.shape_cast %61 : vector<16xf32> to vector<16x1xf32>
    %63 = tpu.transpose %62, [1, 0] : vector<16x1xf32> -> vector<1x16xf32>
    %64 = vector.broadcast %59 : vector<16x1xf32> to vector<16x16xf32>
    %65 = vector.broadcast %63 : vector<1x16xf32> to vector<16x16xf32>
    %66 = arith.addf %64, %65 : vector<16x16xf32>
    %cst_28 = arith.constant 0.000000e+00 : f32
    %67 = vector.broadcast %cst_28 : f32 to vector<16x16xf32>
    %68 = arith.cmpf ogt, %66, %67 : vector<16x16xf32>
    %cst_29 = arith.constant 2.000000e-01 : f32
    %69 = vector.broadcast %cst_29 : f32 to vector<16x16xf32>
    %70 = arith.mulf %69, %66 : vector<16x16xf32>
    %71 = arith.select %68, %66, %70 : vector<16x16xi1>, vector<16x16xf32>
    %cst_30 = arith.constant -1.000000e+30 : f32
    %72 = vector.broadcast %cst_30 : f32 to vector<16x16xf32>
    %73 = arith.select %4, %71, %72 : vector<16x16xi1>, vector<16x16xf32>
    %cst_31 = arith.constant dense<0xFF800000> : vector<16xf32>
    %74 = vector.multi_reduction <maximumf>, %73, %cst_31 [1] : vector<16x16xf32> to vector<16xf32>
    %75 = vector.shape_cast %74 : vector<16xf32> to vector<16x1xf32>
    %76 = vector.broadcast %75 : vector<16x1xf32> to vector<16x16xf32>
    %77 = arith.subf %73, %76 : vector<16x16xf32>
    %78 = math.exp %77 : vector<16x16xf32>
    %cst_32 = arith.constant dense<0.000000e+00> : vector<16xf32>
    %79 = vector.multi_reduction <add>, %78, %cst_32 [1] : vector<16x16xf32> to vector<16xf32>
    %80 = vector.shape_cast %79 : vector<16xf32> to vector<16x1xf32>
    %81 = tpu.reciprocal %80 {approx = true} : vector<16x1xf32> -> vector<16x1xf32>
    %82 = vector.broadcast %81 : vector<16x1xf32> to vector<16x16xf32>
    %83 = arith.mulf %78, %82 : vector<16x16xf32>
    %84 = vector.extract_strided_slice %6 {offsets = [0, 8], sizes = [16, 8], strides = [1, 1]} : vector<16x16xf32> to vector<16x8xf32>
    %cst_33 = arith.constant dense<0.000000e+00> : vector<16x8xf32>
    %85 = tpu.matmul %83, %84, %cst_33 {dimension_numbers = #tpu.dot_dimension_numbers<[1], [0], [0], [1], [0, 0, 1, 1], [], []>} : vector<16x16xf32>, vector<16x8xf32>, vector<16x8xf32> -> vector<16x8xf32>
    %86 = vector.extract_strided_slice %13 {offsets = [0, 8], sizes = [1, 8], strides = [1, 1]} : vector<1x16xf32> to vector<1x8xf32>
    %87 = vector.broadcast %86 : vector<1x8xf32> to vector<16x8xf32>
    %88 = arith.addf %85, %87 : vector<16x8xf32>
    %cst_34 = arith.constant 0.000000e+00 : f32
    %89 = vector.broadcast %cst_34 : f32 to vector<16x8xf32>
    %90 = arith.cmpf ogt, %88, %89 : vector<16x8xf32>
    %91 = math.exp %88 : vector<16x8xf32>
    %cst_35 = arith.constant 1.000000e+00 : f32
    %92 = vector.broadcast %cst_35 : f32 to vector<16x8xf32>
    %93 = arith.subf %91, %92 : vector<16x8xf32>
    %94 = arith.select %90, %88, %93 : vector<16x8xi1>, vector<16x8xf32>
    %95 = vector.extract_strided_slice %14 {offsets = [8, 0], sizes = [8, 128], strides = [1, 1]} : vector<16x128xf32> to vector<8x128xf32>
    %cst_36 = arith.constant dense<0.000000e+00> : vector<16x128xf32>
    %96 = tpu.matmul %94, %95, %cst_36 {dimension_numbers = #tpu.dot_dimension_numbers<[1], [0], [0], [1], [0, 0, 1, 1], [], []>} : vector<16x8xf32>, vector<8x128xf32>, vector<16x128xf32> -> vector<16x128xf32>
    %97 = arith.addf %56, %96 : vector<16x128xf32>
    %c0_37 = arith.constant 0 : index
    %c0_38 = arith.constant 0 : index
    %98 = vector.load %arg8[%c0_37, %c0_38] : memref<1x128xf32, #tpu.memory_space<vmem>>, vector<1x128xf32>
    %99 = vector.broadcast %98 : vector<1x128xf32> to vector<16x128xf32>
    %100 = arith.mulf %97, %99 : vector<16x128xf32>
    %cst_39 = arith.constant dense<0.000000e+00> : vector<16xf32>
    %101 = vector.multi_reduction <add>, %100, %cst_39 [1] : vector<16x128xf32> to vector<16xf32>
    %102 = vector.shape_cast %101 : vector<16xf32> to vector<16x1xf32>
    %c0_40 = arith.constant 0 : index
    %c0_41 = arith.constant 0 : index
    %103 = vector.load %arg7[%c0_40, %c0_41] : memref<1x128xf32, #tpu.memory_space<vmem>>, vector<1x128xf32>
    %104 = vector.broadcast %103 : vector<1x128xf32> to vector<16x128xf32>
    %105 = arith.mulf %97, %104 : vector<16x128xf32>
    %cst_42 = arith.constant dense<0.000000e+00> : vector<16xf32>
    %106 = vector.multi_reduction <add>, %105, %cst_42 [1] : vector<16x128xf32> to vector<16xf32>
    %107 = vector.shape_cast %106 : vector<16xf32> to vector<16x1xf32>
    %108 = tpu.transpose %107, [1, 0] : vector<16x1xf32> -> vector<1x16xf32>
    %109 = vector.broadcast %102 : vector<16x1xf32> to vector<16x16xf32>
    %110 = vector.broadcast %108 : vector<1x16xf32> to vector<16x16xf32>
    %111 = arith.addf %109, %110 : vector<16x16xf32>
    %cst_43 = arith.constant 0.000000e+00 : f32
    %112 = vector.broadcast %cst_43 : f32 to vector<16x16xf32>
    %113 = arith.cmpf ogt, %111, %112 : vector<16x16xf32>
    %cst_44 = arith.constant 2.000000e-01 : f32
    %114 = vector.broadcast %cst_44 : f32 to vector<16x16xf32>
    %115 = arith.mulf %114, %111 : vector<16x16xf32>
    %116 = arith.select %113, %111, %115 : vector<16x16xi1>, vector<16x16xf32>
    %cst_45 = arith.constant -1.000000e+30 : f32
    %117 = vector.broadcast %cst_45 : f32 to vector<16x16xf32>
    %118 = arith.select %4, %116, %117 : vector<16x16xi1>, vector<16x16xf32>
    %cst_46 = arith.constant dense<0xFF800000> : vector<16xf32>
    %119 = vector.multi_reduction <maximumf>, %118, %cst_46 [1] : vector<16x16xf32> to vector<16xf32>
    %120 = vector.shape_cast %119 : vector<16xf32> to vector<16x1xf32>
    %121 = vector.broadcast %120 : vector<16x1xf32> to vector<16x16xf32>
    %122 = arith.subf %118, %121 : vector<16x16xf32>
    %123 = math.exp %122 : vector<16x16xf32>
    %cst_47 = arith.constant dense<0.000000e+00> : vector<16xf32>
    %124 = vector.multi_reduction <add>, %123, %cst_47 [1] : vector<16x16xf32> to vector<16xf32>
    %125 = vector.shape_cast %124 : vector<16xf32> to vector<16x1xf32>
    %126 = tpu.reciprocal %125 {approx = true} : vector<16x1xf32> -> vector<16x1xf32>
    %127 = vector.broadcast %126 : vector<16x1xf32> to vector<16x16xf32>
    %128 = arith.mulf %123, %127 : vector<16x16xf32>
    %cst_48 = arith.constant dense<0.000000e+00> : vector<16x128xf32>
    %129 = tpu.matmul %128, %97, %cst_48 {dimension_numbers = #tpu.dot_dimension_numbers<[1], [0], [0], [1], [0, 0, 1, 1], [], []>} : vector<16x16xf32>, vector<16x128xf32>, vector<16x128xf32> -> vector<16x128xf32>
    %c0_49 = arith.constant 0 : index
    %c0_50 = arith.constant 0 : index
    %130 = vector.load %arg9[%c0_49, %c0_50] : memref<1x128xf32, #tpu.memory_space<vmem>>, vector<1x128xf32>
    %131 = vector.broadcast %130 : vector<1x128xf32> to vector<16x128xf32>
    %132 = arith.addf %129, %131 : vector<16x128xf32>
    %c0_51 = arith.constant 0 : index
    %c0_52 = arith.constant 0 : index
    %133 = vector.load %arg10[%c0_51, %c0_52] : memref<16x128xf32, #tpu.memory_space<vmem>>, vector<16x128xf32>
    tpu.vector_store %arg10[%c0_51, %c0_52], %132 {strides = array<i32>} : memref<16x128xf32, #tpu.memory_space<vmem>>, vector<16x128xf32>,
    return
  }
}

</mosaic_0001>

<bundles_post_ra>
// kernel: tpu_custom_call.1
= control target key start
LH: loop header
LB: loop body
LE: loop exit
PB: predicated region body
PF: predicated region fallthrough
CT: control target
= control target key end

     0   :  { %vm47_vm0 = vcmask 64512   ;;  %s1234_s0 = inlined_call_operand.vmem [shape: f32[16,8], index: 0, kind: input, shape index: {}]   ;;  %s1235_s1 = inlined_call_operand.vmem [shape: s8[16,16], index: 1, kind: input, shape index: {}]   ;;  %s1236_s2 = inlined_call_operand.vmem [shape: f32[8,16], index: 2, kind: input, shape index: {}]   ;;  %s1237_s3 = inlined_call_operand.vmem [shape: f32[1,16], index: 3, kind: input, shape index: {}]   ;;  %s1238_s4 = inlined_call_operand.vmem [shape: f32[1,16], index: 4, kind: input, shape index: {}]   ;;  %s1239_s5 = inlined_call_operand.vmem [shape: f32[1,16], index: 5, kind: input, shape index: {}]   ;;  %s1240_s6 = inlined_call_operand.vmem [shape: f32[16,128], index: 6, kind: input, shape index: {}]   ;;  %s1241_s7 = inlined_call_operand.vmem [shape: f32[1,128], index: 7, kind: input, shape index: {}]   ;;  %s1242_s8 = inlined_call_operand.vmem [shape: f32[1,128], index: 8, kind: input, shape index: {}]   ;;  %s1243_s9 = inlined_call_operand.vmem [shape: f32[1,128], index: 9, kind: input, shape index: {}]   ;;  %s1244_s10 = inlined_call_operand.hbm [shape: f32[16,128], index: 10, kind: output, shape index: {}]  }
   0x1   :  { %v46_v0 = vld [vmem:[%s1236_s2] sm:$0xff]  ;;  %v37_v2 = vld [vmem:[%s1234_s0 + $0x8] sm:$0xff] }
   0x2   :  { %v36_v1 = vld [vmem:[%s1234_s0] sm:$0xff]  ;;  %935 = vmatprep.subr.mxu0 %v46_v0 }
   0x3   :  { %937 = vmatprep.mubr.msk.f32.mxu0 %vm47_vm0, %v36_v1 }
   0x4   :  { %15 = vsyncpa [#allocation3], 0  ;;  %936 = vmatpush3.msra.mxu0 %v46_v0  ;;  %v891_v3 = vld [vmem:[%s1237_s3] ss:$0 sm:$0xff]  ;;  %s1051_s0 = smov 120   ;;  %v194_v29 = vlaneseq  ;;  %vm208_vm4 = vcmask 130048  }
   0x5   :  { %938 = vmatmul.mubr.msk.f32.vlgmr.msra.gmra.mrb[0].mxu0 %vm47_vm0, %v37_v2  ;;  %v890_v4 = vld [vmem:[%s1238_s4] ss:$0 sm:$0xff]  ;;  %s1052_s29 = smov [#allocation2]  }
   0x6   :  { %v195_v31 = vshrl.u32 %v194_v29, 7  ;;  %v911_v32 = vld [vmem:[%s1235_s1] sm:$0xf]   ;;  %s877_s30 = sshll.u32 %s1052_s29, 4  ;;  %s878_s30 = int_to_ptr.vmem [resolvable:$true] %s877_s30 }
   0x7   :  { %v913_v35 = vunpack.c.1.s8 %v911_v32  ;;  %v912_v37 = vunpack.c.0.s8 %v911_v32  ;;  %s1027_s11 = scalar_lea.vmem %s878_s30, 256  ;;  %p1032_p1 = scmp.lt.s32.totalorder %s878_s30, %s878_s30 }
   0x8   :  { %v1154_v36 = vsub.s32 0, %v195_v31  ;;  %p1028_p0 = scmp.ne.s32.totalorder %s878_s30, %s1027_s11  ;;  %p1033_p2 = scmp.lt.s32.totalorder %s1027_s11, %s1027_s11 }
   0x9   :  { %v1156_v40 = vcvt.s32.f32 %v913_v35  ;;  %v1159_v42 = vcvt.s32.f32 %v912_v37 }
   0xa   :  { %p1034_p3 = por %p1033_p2, %p1032_p1 }
   0xb   :  { %vm45_vm1 = vcmp.gt.f32.partialorder %v1156_v40, 0.0  ;;  %vm44_vm5 = vcmp.gt.f32.partialorder %v1159_v42, 0.0 }
   0xc   :  { %p1035_p4 = pnand %p1034_p3, %p1028_p0 }
  0xd8   :  { %v1127_v5 = vpop.f32.mrb[0].mxu0 }
  0xd9   :  { %v1129_v6 = vpop.f32.mrb[1].mxu0  ;;  %v146_v11 = vmul.f32 %v1127_v5, %v891_v3  ;;  %v137_v12 = vmul.f32 %v1127_v5, %v890_v4 }
  0xda   :  { %v971_v7 = vpack.c.bf16 %v1127_v5, %v1129_v6  ;;  %v145_v8 = vmul.f32 %v891_v3, %v1129_v6  ;;  %v136_v9 = vmul.f32 %v890_v4, %v1129_v6  ;;  %v990_v10 = vpack.i.bf16 %v1127_v5, %v1129_v6 }
  0xdb   :  { %v159_v19 = vsel %vm47_vm0, %v146_v11, 0.0  ;;  %v153_v24 = vsel %vm47_vm0, %v137_v12, 0.0 }
  0xdc   :  { %972 = vmatprep.subr.bf16.mxu1 %v971_v7  ;;  %344 = vrot.lane.b32.xlu0 %v145_v8, %s1051_s0  ;;  %v156_v17 = vsel %vm47_vm0, %v145_v8, 0.0  ;;  %v150_v20 = vsel %vm47_vm0, %v136_v9, 0.0 }
  0xdd   :  { %330 = vrot.lane.b32.xlu1 %v136_v9, %s1051_s0  ;;  %974 = vmatpush3.bf16.msra.mxu1 %v971_v7 }
  0xe0   :  { %346 = vrot.lane.b32.xlu0 %v146_v11, %s1051_s0 }
  0xe1   :  { %332 = vrot.lane.b32.xlu1 %v137_v12, %s1051_s0 }
 0x14e   :  { %v345_v13 = vpop.permute.xlu0 %344 }
 0x14f   :  { %v350_v14 = vsel %vm47_vm0, %v345_v13, 0.0  ;;  %v331_v15 = vpop.permute.xlu1 %330 }
 0x150   :  { %351 = vadd.xlane.f32.xlu0 %v350_v14  ;;  %v336_v23 = vsel %vm47_vm0, %v331_v15, 0.0 }
 0x152   :  { %v347_v16 = vpop.permute.xlu0 %346 }
 0x153   :  { %v353_v18 = vsel %vm47_vm0, %v347_v16, 0.0  ;;  %v333_v21 = vpop.permute.xlu1 %332 }
 0x154   :  { %157 = vadd.xlane.f32.xlu0 %v156_v17  ;;  %354 = vadd.xlane.f32.xlu1 %v353_v18  ;;  %v339_v22 = vsel %vm47_vm0, %v333_v21, 0.0 }
 0x158   :  { %160 = vadd.xlane.f32.xlu0 %v159_v19  ;;  %151 = vadd.xlane.f32.xlu1 %v150_v20 }
 0x15c   :  { %340 = vadd.xlane.f32.xlu0 %v339_v22  ;;  %337 = vadd.xlane.f32.xlu1 %v336_v23 }
 0x160   :  { %154 = vadd.xlane.f32.xlu0 %v153_v24  ;;  %v892_v24 = vld [vmem:[%s1239_s5] ss:$0 sm:$0xff] }
 0x1dd   :  { %v352_v25 = vpop.xlane.xlu0 %351 }
 0x1de   :  { %356 = vxpose.xlu1.b32.start [1/2] (short) (narrow) %v352_v25, 8 }
 0x1e1   :  { %v158_v26 = vpop.xlane.xlu0 %157  ;;  %v355_v27 = vpop.xlane.xlu1 %354 }
 0x1e2   :  { %162 = vxpose.xlu0.b32.start [1/2] (short) (narrow) %v158_v26, 8  ;;  %357 = vxpose.xlu1.b32.end [2/2] (short) (narrow) %v355_v27, 8 }
 0x1e5   :  { %v161_v28 = vpop.xlane.xlu0 %160  ;;  %v152_v30 = vpop.xlane.xlu1 %151 }
 0x1e6   :  { %163 = vxpose.xlu0.b32.end [2/2] (short) (narrow) %v161_v28, 8 }
 0x1e9   :  { %v341_v33 = vpop.xlane.xlu0 %340  ;;  %v338_v34 = vpop.xlane.xlu1 %337 }
 0x1ed   :  { %v155_v38 = vpop.xlane.xlu0 %154 }
 0x25e   :  { %v372_v39 = vpop.trf.xlu1 }
 0x25f   :  { %v391_v41 = vrot.slane %v372_v39, %v1154_v36  ;;  %v149_v39 = vld [vmem:[%s1240_s6 + $0x8] sm:$0xff] }
 0x260   :  { %954 = vmatprep.subr.mxu1 %v149_v39 }
 0x261   :  { %v392_v43 = vadd.f32 %v391_v41, %v338_v34  ;;  %v393_v44 = vadd.f32 %v391_v41, %v341_v33  ;;  %v148_v41 = vld [vmem:[%s1240_s6] sm:$0xff] }
 0x262   :  { %v178_v45 = vpop.trf.xlu0 }
 0x263   :  { %v197_v46 = vrot.slane %v178_v45, %v1154_v36  ;;  %vm395_vm2 = vcmp.gt.f32.partialorder %v393_v44, 0.0  ;;  %v397_v47 = vmul.f32 0.2, %v393_v44  ;;  %vm394_vm3 = vcmp.gt.f32.partialorder %v392_v43, 0.0 }
 0x264   :  { %v396_v48 = vmul.f32 0.2, %v392_v43 }
 0x265   :  { %v198_v49 = vadd.f32 %v197_v46, %v152_v30  ;;  %v199_v50 = vadd.f32 %v197_v46, %v155_v38  ;;  %v399_v51 = vsel %vm395_vm2, %v393_v44, %v397_v47 }
 0x266   :  { %v401_v52 = vsel %vm45_vm1, %v399_v51, -1e+30  ;;  %v398_v53 = vsel %vm394_vm3, %v392_v43, %v396_v48 }
 0x267   :  { %v405_v54 = vsel %vm208_vm4, %v401_v52, -inf  ;;  %v400_v55 = vsel %vm44_vm5, %v398_v53, -1e+30  ;;  %vm200_vm6 = vcmp.gt.f32.partialorder %v198_v49, 0.0  ;;  %v202_v56 = vmul.f32 0.2, %v198_v49 }
 0x268   :  { %406 = vmax.xlane.f32.xlu1 %v405_v54  ;;  %v402_v57 = vsel %vm208_vm4, %v400_v55, -inf  ;;  %vm201_vm7 = vcmp.gt.f32.partialorder %v199_v50, 0.0  ;;  %v203_v58 = vmul.f32 0.2, %v199_v50 }
 0x269   :  { %403 = vmax.xlane.f32.xlu0 %v402_v57  ;;  %v204_v59 = vsel %vm200_vm6, %v198_v49, %v202_v56 }
 0x26a   :  { %v206_v60 = vsel %vm44_vm5, %v204_v59, -1e+30  ;;  %v205_v61 = vsel %vm201_vm7, %v199_v50, %v203_v58 }
 0x26b   :  { %v209_v62 = vsel %vm208_vm4, %v206_v60, -inf  ;;  %v207_v63 = vsel %vm45_vm1, %v205_v61, -1e+30 }
 0x26c   :  { %210 = vmax.xlane.f32.xlu1 %v209_v62  ;;  %v212_v0 = vsel %vm208_vm4, %v207_v63, -inf }
 0x26d   :  { %213 = vmax.xlane.f32.xlu0 %v212_v0 }
 0x2f5   :  { %v407_v1 = vpop.xlane.xlu1 %406 }
 0x2f6   :  { %v409_v2 = vsub.f32 %v401_v52, %v407_v1  ;;  %v404_v3 = vpop.xlane.xlu0 %403 }
 0x2f7   :  { %v408_v4 = vsub.f32 %v400_v55, %v404_v3 }
 0x2f8   :  { %v412_v7 = vmul.f32 1.442695, %v409_v2 }
 0x2f9   :  { %v410_v8 = vmul.f32 1.442695, %v408_v4  ;;  %v211_v9 = vpop.xlane.xlu1 %210  ;;  %v906_v4 = vld [vmem:[%s1241_s7] ss:$0 sm:$0xff] }
 0x2fa   :  { %995 = vpow2.f32 %v412_v7  ;;  %v215_v11 = vsub.f32 %v206_v60, %v211_v9  ;;  %v214_v12 = vpop.xlane.xlu0 %213 }
 0x2fb   :  { %997 = vpow2.f32 %v410_v8  ;;  %v216_v13 = vsub.f32 %v207_v63, %v214_v12 }
 0x2fc   :  { %v217_v14 = vmul.f32 1.442695, %v215_v11 }
 0x2fd   :  { %v219_v15 = vmul.f32 1.442695, %v216_v13  ;;  %v905_v13 = vld [vmem:[%s1242_s8] ss:$0 sm:$0xff] }
 0x2fe   :  { %999 = vpow2.f32 %v217_v14 }
 0x2ff   :  { %1001 = vpow2.f32 %v219_v15 }
 0x304   :  { %v996_v16 = vpop.eup %995 }
 0x305   :  { %v998_v17 = vpop.eup %997  ;;  %v417_v18 = vsel %vm208_vm4, %v996_v16, 0.0 }
 0x306   :  { %418 = vadd.xlane.f32.xlu0 %v417_v18  ;;  %v414_v19 = vsel %vm208_vm4, %v998_v17, 0.0 }
 0x307   :  { %415 = vadd.xlane.f32.xlu1 %v414_v19 }
 0x308   :  { %v1000_v20 = vpop.eup %999 }
 0x309   :  { %v1002_v21 = vpop.eup %1001  ;;  %v221_v22 = vsel %vm208_vm4, %v1000_v20, 0.0 }
 0x30a   :  { %v224_v23 = vsel %vm208_vm4, %v1002_v21, 0.0 }
 0x30b   :  { %222 = vadd.xlane.f32.xlu1 %v221_v22  ;;  %225 = vadd.xlane.f32.xlu0 %v224_v23 }
 0x31c   :  { %991 = vrot.lane.b32.xlu1 %v990_v10, %s1051_s0 }
 0x321   :  { %432 = vrot.lane.b32.xlu0 %v892_v24, %s1051_s0 }
 0x393   :  { %v419_v25 = vpop.xlane.xlu0 %418 }
 0x394   :  { %v416_v26 = vpop.xlane.xlu1 %415 }
 0x395   :  { %1003 = vrcp.f32 %v416_v26 }
 0x396   :  { %1005 = vrcp.f32 %v419_v25 }
 0x398   :  { %v223_v27 = vpop.xlane.xlu1 %222  ;;  %v226_v28 = vpop.xlane.xlu0 %225 }
 0x399   :  { %1007 = vrcp.f32 %v223_v27 }
 0x39a   :  { %1009 = vrcp.f32 %v226_v28 }
 0x39c   :  { %v992_v29 = vpop.permute.xlu1 %991  ;;  %v433_v43 = vpop.permute.xlu0 %432 }
 0x39d   :  { %v994_v30 = vunpack.i.h.bf16 %v992_v29  ;;  %v993_v31 = vunpack.i.l.bf16 %v992_v29 }
 0x39f   :  { %v1004_v32 = vpop.eup %1003  ;;  %v975_v5 = vpack.c.bf16 %v994_v30, %v993_v31 }
 0x3a0   :  { %v1006_v6 = vpop.eup %1005  ;;  %v422_v10 = vmul.f32 %v1004_v32, %v998_v17 }
 0x3a1   :  { %976 = vmatprep.subr.bf16.mxu0 %v975_v5  ;;  %v423_v34 = vmul.f32 %v1006_v6, %v996_v16 }
 0x3a2   :  { %978 = vmatpush3.bf16.msra.mxu0 %v975_v5  ;;  %951 = vmatprep.mubr.msk.f32.mxu0 %vm208_vm4, %v422_v10 }
 0x3a3   :  { %v1008_v33 = vpop.eup %1007 }
 0x3a4   :  { %v1010_v35 = vpop.eup %1009  ;;  %v229_v37 = vmul.f32 %v1008_v33, %v1000_v20 }
 0x3a5   :  { %952 = vmatmul.mubr.msk.f32.vlgmr.msra.gmra.mrb[2].mxu0 %vm208_vm4, %v423_v34  ;;  %v230_v38 = vmul.f32 %v1010_v35, %v1002_v21 }
 0x3a6   :  { %944 = vmatprep.mubr.msk.f32.mxu1 %vm208_vm4, %v229_v37 }
 0x3a7   :  { %945 = vmatmul.mubr.msk.f32.vlgmr.msra.gmra.mrb[0].mxu1 %vm208_vm4, %v230_v38 }
 0x3a8   :  { %955 = vmatpush3.msra.mxu1 %v149_v39 }
 0x3a9   :  { %959 = vmatprep.subr.mxu1 %v148_v41 }
 0x478   :  { %v953_v44 = vpop.f32.mrb[2].mxu0 }
 0x479   :  { %v513_v45 = vadd.f32 %v953_v44, %v433_v43  ;;  %v507_v46 = vpop.f32.mrb[3].mxu0 }
 0x47a   :  { %v508_v47 = vadd.f32 %v507_v46, %v433_v43  ;;  %v946_v48 = vpop.f32.mrb[0].mxu1 }
 0x47b   :  { %v520_v49 = vmul.f32 1.442695, %v513_v45  ;;  %v315_v50 = vadd.f32 %v946_v48, %v892_v24  ;;  %v309_v51 = vpop.f32.mrb[1].mxu1  ;;  %vm517_vm9 = vcmp.gt.f32.partialorder %v513_v45, 0.0 }
 0x47c   :  { %v518_v52 = vmul.f32 1.442695, %v508_v47  ;;  %v310_v53 = vadd.f32 %v892_v24, %v309_v51  ;;  %vm516_vm8 = vcmp.gt.f32.partialorder %v508_v47, 0.0 }
 0x47d   :  { %1011 = vpow2.f32 %v520_v49  ;;  %v322_v55 = vmul.f32 1.442695, %v315_v50  ;;  %vm319_vm11 = vcmp.gt.f32.partialorder %v315_v50, 0.0 }
 0x47e   :  { %1013 = vpow2.f32 %v518_v52  ;;  %v320_v54 = vmul.f32 1.442695, %v310_v53  ;;  %vm318_vm10 = vcmp.gt.f32.partialorder %v310_v53, 0.0 }
 0x480   :  { %1015 = vpow2.f32 %v320_v54 }
 0x481   :  { %1017 = vpow2.f32 %v322_v55 }
 0x487   :  { %v1012_v56 = vpop.eup %1011 }
 0x488   :  { %v1014_v57 = vpop.eup %1013  ;;  %v900_v58 = vadd.f32 -1.0, %v1012_v56 }
 0x489   :  { %v899_v59 = vadd.f32 -1.0, %v1014_v57 }
 0x48a   :  { %v1016_v60 = vpop.eup %1015  ;;  %v525_v63 = vsel %vm517_vm9, %v513_v45, %v900_v58  ;;  %v907_v45 = vld [vmem:[%s1243_s9] ss:$0 sm:$0xff] }
 0x48b   :  { %v524_v61 = vsel %vm516_vm8, %v508_v47, %v899_v59  ;;  %v895_v62 = vadd.f32 -1.0, %v1016_v60  ;;  %v1018_v0 = vpop.eup %1017 }
 0x48c   :  { %956 = vmatprep.mubr.msk.f32.mxu1 %vm47_vm0, %v524_v61  ;;  %v896_v2 = vadd.f32 -1.0, %v1018_v0 }
 0x48d   :  { %957 = vmatmul.mubr.msk.f32.vlgmr.msra.gmra.mrb[2].mxu1 %vm47_vm0, %v525_v63  ;;  %v326_v1 = vsel %vm318_vm10, %v310_v53, %v895_v62 }
 0x48e   :  { %960 = vmatpush3.msra.mxu1 %v148_v41  ;;  %961 = vmatprep.mubr.msk.f32.mxu1 %vm47_vm0, %v326_v1  ;;  %v327_v3 = vsel %vm319_vm11, %v315_v50, %v896_v2 }
 0x495   :  { %962 = vmatmul.mubr.msk.f32.vlgmr.msra.gmra.mrb[2].mxu1 %vm47_vm0, %v327_v3 }
 0x568   :  { %v963_v7 = vpop.f32.mrb[2].mxu1 }
 0x569   :  { %v679_v8 = vpop.f32.mrb[3].mxu1  ;;  %v709_v9 = vmul.f32 %v963_v7, %v906_v4  ;;  %v696_v14 = vmul.f32 %v963_v7, %v905_v13 }
 0x56a   :  { %v979_v11 = vpack.c.bf16 %v963_v7, %v679_v8  ;;  %v708_v12 = vmul.f32 %v906_v4, %v679_v8  ;;  %v695_v15 = vmul.f32 %v905_v13, %v679_v8 }
 0x56b   :  { %712 = vadd.xlane.f32.xlu0 %v709_v9 }
 0x56c   :  { %980 = vmatprep.subr.bf16.mxu0 %v979_v11  ;;  %710 = vadd.xlane.f32.xlu1 %v708_v12 }
 0x56d   :  { %982 = vmatpush3.bf16.msra.mxu0 %v979_v11 }
 0x56f   :  { %699 = vadd.xlane.f32.xlu0 %v696_v14 }
 0x570   :  { %697 = vadd.xlane.f32.xlu1 %v695_v15 }
 0x5f8   :  { %v713_v17 = vpop.xlane.xlu0 %712 }
 0x5f9   :  { %v711_v16 = vpop.xlane.xlu1 %710 }
 0x5fa   :  { %714 = vxpose.xlu1.b32.start [1/2] (short) (narrow) %v711_v16, 8 }
 0x5fc   :  { %v700_v21 = vpop.xlane.xlu0 %699 }
 0x5fd   :  { %v698_v18 = vpop.xlane.xlu1 %697 }
 0x5fe   :  { %715 = vxpose.xlu1.b32.end [2/2] (short) (narrow) %v713_v17, 8 }
 0x67a   :  { %v730_v19 = vpop.trf.xlu1 }
 0x67b   :  { %v749_v20 = vrot.slane %v730_v19, %v1154_v36 }
 0x67d   :  { %v750_v22 = vadd.f32 %v749_v20, %v698_v18  ;;  %v751_v23 = vadd.f32 %v749_v20, %v700_v21 }
 0x67f   :  { %vm752_vm12 = vcmp.gt.f32.partialorder %v750_v22, 0.0  ;;  %v754_v24 = vmul.f32 0.2, %v750_v22  ;;  %vm753_vm13 = vcmp.gt.f32.partialorder %v751_v23, 0.0  ;;  %v755_v25 = vmul.f32 0.2, %v751_v23 }
 0x681   :  { %v756_v26 = vsel %vm752_vm12, %v750_v22, %v754_v24  ;;  %v757_v27 = vsel %vm753_vm13, %v751_v23, %v755_v25 }
 0x682   :  { %v758_v28 = vsel %vm44_vm5, %v756_v26, -1e+30  ;;  %v759_v30 = vsel %vm45_vm1, %v757_v27, -1e+30 }
 0x683   :  { %v760_v29 = vsel %vm208_vm4, %v758_v28, -inf  ;;  %v763_v36 = vsel %vm208_vm4, %v759_v30, -inf }
 0x684   :  { %761 = vmax.xlane.f32.xlu0 %v760_v29 }
 0x688   :  { %764 = vmax.xlane.f32.xlu0 %v763_v36 }
 0x711   :  { %v762_v31 = vpop.xlane.xlu0 %761 }
 0x712   :  { %v766_v32 = vsub.f32 %v758_v28, %v762_v31 }
 0x714   :  { %v768_v5 = vmul.f32 1.442695, %v766_v32 }
 0x715   :  { %v765_v6 = vpop.xlane.xlu0 %764 }
 0x716   :  { %1019 = vpow2.f32 %v768_v5  ;;  %v767_v10 = vsub.f32 %v759_v30, %v765_v6 }
 0x718   :  { %v770_v33 = vmul.f32 1.442695, %v767_v10 }
 0x71a   :  { %1021 = vpow2.f32 %v770_v33 }
 0x720   :  { %v1020_v34 = vpop.eup %1019 }
 0x721   :  { %v772_v42 = vsel %vm208_vm4, %v1020_v34, 0.0 }
 0x722   :  { %773 = vadd.xlane.f32.xlu0 %v772_v42 }
 0x724   :  { %v1022_v35 = vpop.eup %1021 }
 0x725   :  { %v775_v37 = vsel %vm208_vm4, %v1022_v35, 0.0 }
 0x726   :  { %776 = vadd.xlane.f32.xlu0 %v775_v37 }
 0x7af   :  { %v774_v40 = vpop.xlane.xlu0 %773 }
 0x7b0   :  { %1023 = vrcp.f32 %v774_v40 }
 0x7b3   :  { %v777_v38 = vpop.xlane.xlu0 %776 }
 0x7b4   :  { %1025 = vrcp.f32 %v777_v38 }
 0x7ba   :  { %v1024_v39 = vpop.eup %1023 }
 0x7bb   :  { %v780_v41 = vmul.f32 %v1024_v39, %v1020_v34 }
 0x7bd   :  { %968 = vmatprep.mubr.msk.f32.mxu0 %vm208_vm4, %v780_v41 }
 0x7be   :  { %v1026_v43 = vpop.eup %1025 }
 0x7bf   :  { %v781_v44 = vmul.f32 %v1026_v43, %v1022_v35 }
 0x7c1   :  { %969 = vmatmul.mubr.msk.f32.vlgmr.msra.gmra.mrb[4].mxu0 %vm208_vm4, %v781_v44 }
 0x894   :  { %v970_v46 = vpop.f32.mrb[4].mxu0 }
 0x895   :  { %v867_v47 = vadd.f32 %v970_v46, %v907_v45  ;;  %v861_v48 = vpop.f32.mrb[5].mxu0 }
 0x896   :  { %v862_v49 = vadd.f32 %v907_v45, %v861_v48 }
 0x897   :  { %871 = vst [vmem:[#allocation2 + $0x8] sm:$0xff] %v867_v47 }
 0x898   :  { %870 = vst [vmem:[#allocation2] sm:$0xff] %v862_v49 }
 0x899   :  { %1038 = shalt.err (!%p1035_p4)
}
 0x89a   :  { %s1039_s9 = scalar_lea.hbm %s1244_s10, 256 }
 0x89b   :  { %p1040_p5 = scmp.ne.s32.totalorder %s1244_s10, %s1039_s9  ;;  %p1043_p6 = scmp.lt.u32.totalorder %s1039_s9, %s1244_s10 }
 0x89d   :  { %p1045_p7 = pnand %p1043_p6, %p1040_p5 }
 0x89f   :  { %1048 = shalt.err (!%p1045_p7)
}
 0x8a0   :  { %s1053_s18 = smov 128   ;;  %s1054_s19 = smov 8  }
 0x8a1   :  { %883 = dma.vmem_to_hbm [thread:$0]  %s878_s30, 256, %s1244_s10, [#allocation3], %s1053_s18, %s1053_s18, %s1054_s19  }
 0x8a2   :  { %1049 = dma.done.wait [#allocation3], 256  }
 0x8a3   :  { %1050 = vsyncadd [#allocation3], 4294967040 }
 0x8a4   :  { %887 = vsyncpa [#allocation3], 1 }

</bundles_post_ra>
